<compile_context>
chip_gen: v7x
topology: tpu7x:2x2x1
jax: 0.10.0
libtpu: 0.0.40
codegen_flags: <defaults>
</compile_context>

<pallas_src>
import functools
import math

import jax
import jax.numpy as jnp
from jax.experimental import pallas as pl
from jax.experimental.pallas import tpu as pltpu


def _round_up(x, m):
    return ((x + m - 1) // m) * m


# ---------------------------------------------------------------------------
# Pallas kernel: full transformer-layer forward + per-query attention entropy
# ---------------------------------------------------------------------------
def _mem_transformer_kernel(*refs, num_heads: int, has_mem: bool,
                            mask_pad: bool, out_w: int):
    it = iter(refs)
    x_ref = next(it)
    mem_ref = next(it) if has_mem else None
    nvalid_ref = next(it) if mask_pad else None
    wqkv_ref = next(it)
    wo_ref = next(it)
    wf1_ref = next(it)
    wf2_ref = next(it)
    vec_ref = next(it)          # (8, 4E) f32: packed biases / LayerNorm params
    out_ref = next(it)

    S, E = x_ref.shape
    H = num_heads
    dh = E // H
    F = 4 * E

    x = x_ref[...]                                           # (S, E) f32
    if has_mem:
        kv = jnp.concatenate([mem_ref[...], x], axis=0)      # (L, E), tile-aligned
    else:
        kv = x
    L = kv.shape[0]

    # Packed bias / LayerNorm vectors (one VMEM tile, single DMA).
    b_qkv = vec_ref[0:1, 0:3 * E]
    b_o   = vec_ref[1:2, 0:E]
    g1    = vec_ref[2:3, 0:E]
    be1   = vec_ref[3:4, 0:E]
    b_ff1 = vec_ref[4:5, 0:F]
    b_ff2 = vec_ref[5:6, 0:E]
    g2    = vec_ref[6:7, 0:E]
    be2   = vec_ref[7:8, 0:E]

    # Fused QKV projection: ONE bf16 MXU push, f32 accumulation.
    # 1/sqrt(dh) is already folded into the Q columns of w_qkv / b_qkv.
    qkv = jnp.dot(kv.astype(jnp.bfloat16), wqkv_ref[...],
                  preferred_element_type=jnp.float32) + b_qkv   # (L, 3E) f32
    qkv_bf = qkv.astype(jnp.bfloat16)
    q = qkv_bf[L - S:, 0:E]          # x is the tail of kv -> its Q rows
    k = qkv_bf[:, E:2 * E]
    v = qkv_bf[:, 2 * E:3 * E]

    if mask_pad:
        # memory rows [n_valid, L - S) are zero padding -> mask their scores.
        col = jax.lax.broadcasted_iota(jnp.int32, (S, L), 1)
        n_valid = nvalid_ref[0]
        kv_valid = (col < n_valid) | (col >= (L - S))

    # Per-head attention; head outputs accumulate in registers (no scratch
    # roundtrip).  H is small -> static unroll keeps vreg pressure low here.
    w_sum = jnp.zeros((S, L), jnp.float32)
    head_outs = []
    for h in range(H):
        lo, hi = h * dh, (h + 1) * dh
        s = jax.lax.dot_general(q[:, lo:hi], k[:, lo:hi],
                                (((1,), (1,)), ((), ())),
                                preferred_element_type=jnp.float32)   # (S, L)
        if mask_pad:
            s = jnp.where(kv_valid, s, -1e30)
        m = jnp.max(s, axis=-1, keepdims=True)
        p = jnp.exp(s - m)
        # exact normalisation: this entropy drives top-k memory eviction.
        p = p * pl.reciprocal(jnp.sum(p, axis=-1, keepdims=True))
        w_sum = w_sum + p
        head_outs.append(jnp.dot(p.astype(jnp.bfloat16), v[:, lo:hi],
                                 preferred_element_type=jnp.float32))
    heads = jnp.concatenate(head_outs, axis=-1)                       # (S, E)

    attn_out = jnp.dot(heads.astype(jnp.bfloat16), wo_ref[...],
                       preferred_element_type=jnp.float32) + b_o

    def layer_norm(z, g, b):
        mu = jnp.mean(z, axis=-1, keepdims=True)
        var = jnp.mean((z - mu) ** 2, axis=-1, keepdims=True)
        return (z - mu) * jax.lax.rsqrt(var + 1e-5) * g + b

    # residual + norm1
    x2 = layer_norm(x + attn_out, g1, be1)

    # feed-forward: Linear(E, 4E) -> ReLU -> Linear(4E, E), bf16 MXU operands.
    h1 = jnp.dot(x2.astype(jnp.bfloat16), wf1_ref[...],
                 preferred_element_type=jnp.float32) + b_ff1
    h1 = jnp.maximum(h1, 0.0)
    ff = jnp.dot(h1.astype(jnp.bfloat16), wf2_ref[...],
                 preferred_element_type=jnp.float32) + b_ff2

    # residual + norm2
    y = layer_norm(x2 + ff, g2, be2)

    # entropy of head-averaged attention weights (1/H folded in once)
    aw = w_sum * (1.0 / H)
    ent = -jnp.sum(aw * jnp.log(aw + 1e-10), axis=-1, keepdims=True)   # (S, 1)

    # single lane-dense (S, out_w) store: [ y | ent broadcast ]
    out_ref[...] = jnp.concatenate(
        [y, jnp.broadcast_to(ent, (S, out_w - E))], axis=-1)


# ---------------------------------------------------------------------------
# Kernel launcher
# ---------------------------------------------------------------------------
def _run_layer_kernel(kparams, xq, mem_x, num_heads):
    S, E = xq.shape
    has_mem = mem_x is not None
    out_w = _round_up(E + 1, 128)   # lane-dense output slab width

    vmem = pl.BlockSpec(memory_space=pltpu.MemorySpace.VMEM)
    smem = pl.BlockSpec(memory_space=pltpu.MemorySpace.SMEM)

    args, in_specs = [xq], [vmem]
    mask_pad = False
    if has_mem:
        M = mem_x.shape[0]
        pad = (-M) % 8
        if pad:   # tile-align the sublane concat / q tail slice, mask pad rows
            mem_x = jnp.concatenate(
                [mem_x, jnp.zeros((pad, E), mem_x.dtype)], axis=0)
            mask_pad = True
        args.append(mem_x)
        in_specs.append(vmem)
        if mask_pad:
            args.append(jnp.array([M], jnp.int32))
            in_specs.append(smem)
    args += [kparams["w_qkv"], kparams["w_o"],
             kparams["w_ff1"], kparams["w_ff2"], kparams["vec"]]
    in_specs += [vmem] * 5

    # VMEM limit from actual buffer bytes (no grid -> single-buffered inputs).
    buf_bytes = sum(int(a.size) * a.dtype.itemsize for a in args)
    buf_bytes += S * out_w * 4
    vmem_limit = int(min(max(2 * buf_bytes + (4 << 20), 16 << 20), 64 << 20))

    slab = pl.pallas_call(
        functools.partial(_mem_transformer_kernel, num_heads=num_heads,
                          has_mem=has_mem, mask_pad=mask_pad, out_w=out_w),
        out_shape=jax.ShapeDtypeStruct((S, out_w), jnp.float32),
        in_specs=in_specs,
        out_specs=vmem,
        compiler_params=pltpu.CompilerParams(vmem_limit_bytes=vmem_limit),
    )(*args)
    return slab[:, :E], slab[:, E]


# ---------------------------------------------------------------------------
# Module wrapper (memory bookkeeping is static-shape glue in plain JAX)
# ---------------------------------------------------------------------------
def memory_transformer_layer(kparams, x, mem_x, mem_ent, *, num_heads, mem_size):
    """x: (1, S, E); mem_x: (M, E) or None; mem_ent: (M,) or None."""
    B, S, E = x.shape
    assert B == 1, "module semantics assume batch size 1"
    assert E % num_heads == 0, "embed_dim must be divisible by num_heads"
    xq = x[0]

    out2d, ent = _run_layer_kernel(kparams, xq, mem_x, num_heads)
    out = out2d[None, :, :]

    # memory update (detach is a no-op here: forward only); single concat.
    if mem_x is None:
        mem_x_new, mem_ent_new = xq, ent
    else:
        mem_x_new = jnp.concatenate([mem_x, xq], axis=0)
        mem_ent_new = jnp.concatenate([mem_ent, ent], axis=0)

    eps = 1e-10
    total_ent = jnp.sum(mem_ent_new) + eps
    if mem_x_new.shape[0] > mem_size:
        kept_vals, idx = jax.lax.top_k(mem_ent_new, mem_size)
        ratio = jnp.sum(kept_vals) / total_ent
        mem_x_new = mem_x_new[idx]
        mem_ent_new = kept_vals
    else:
        ratio = jnp.float32(1.0)

    return out, mem_x_new, mem_ent_new, ratio


# ---------------------------------------------------------------------------
# Parameters: PyTorch-style f32 params + one-time kernel-param transform
# ---------------------------------------------------------------------------
def init_params(key, embed_dim):
    E, F = embed_dim, 4 * embed_dim
    ks = jax.random.split(key, 8)
    n = lambda k, s: (0.02 * jax.random.normal(k, s)).astype(jnp.float32)
    return {
        "w_qkv": n(ks[0], (E, 3 * E)), "b_qkv": n(ks[1], (1, 3 * E)),
        "w_o": n(ks[2], (E, E)), "b_o": jnp.zeros((1, E), jnp.float32),
        "g1": jnp.ones((1, E), jnp.float32), "be1": jnp.zeros((1, E), jnp.float32),
        "g2": jnp.ones((1, E), jnp.float32), "be2": jnp.zeros((1, E), jnp.float32),
        "w_ff1": n(ks[3], (E, F)), "b_ff1": jnp.zeros((1, F), jnp.float32),
        "w_ff2": n(ks[4], (F, E)), "b_ff2": jnp.zeros((1, E), jnp.float32),
    }


def prepare_kernel_params(params, num_heads):
    """One-time transform: fold 1/sqrt(dh) into the Q columns, cast matmul
    weights to bf16, pack the eight (1,.) vectors into one (8, 4E) f32 slab."""
    E = params["w_o"].shape[0]
    F = 4 * E
    scale = 1.0 / math.sqrt(E // num_heads)
    w_qkv = jnp.concatenate(
        [params["w_qkv"][:, :E] * scale, params["w_qkv"][:, E:]], axis=1)
    b_qkv = jnp.concatenate(
        [params["b_qkv"][:, :E] * scale, params["b_qkv"][:, E:]], axis=1)

    def row(v):
        v = v.reshape(1, -1).astype(jnp.float32)
        return jnp.pad(v, ((0, 0), (0, F - v.shape[1])))

    vec = jnp.concatenate(
        [row(b_qkv), row(params["b_o"]), row(params["g1"]), row(params["be1"]),
         row(params["b_ff1"]), row(params["b_ff2"]), row(params["g2"]),
         row(params["be2"])], axis=0)                     # (8, 4E) f32

    bf = lambda w: w.astype(jnp.bfloat16)
    return {"w_qkv": bf(w_qkv), "w_o": bf(params["w_o"]),
            "w_ff1": bf(params["w_ff1"]), "w_ff2": bf(params["w_ff2"]),
            "vec": vec}


# ---------------------------------------------------------------------------
# Pure-JAX f32 reference (faithful to the PyTorch math) for correctness checks
# ---------------------------------------------------------------------------
def _ref_forward(params, xq, kv, num_heads):
    S, E = xq.shape
    dh = E // num_heads
    wq, wk, wv = (params["w_qkv"][:, :E], params["w_qkv"][:, E:2 * E],
                  params["w_qkv"][:, 2 * E:])
    bq, bk, bv = (params["b_qkv"][:, :E], params["b_qkv"][:, E:2 * E],
                  params["b_qkv"][:, 2 * E:])
    q = (xq @ wq + bq) / math.sqrt(dh)
    k = kv @ wk + bk
    v = kv @ wv + bv
    qh = q.reshape(S, num_heads, dh).transpose(1, 0, 2)
    kh = k.reshape(-1, num_heads, dh).transpose(1, 0, 2)
    vh = v.reshape(-1, num_heads, dh).transpose(1, 0, 2)
    s = jnp.einsum("hqd,hkd->hqk", qh, kh)
    p = jax.nn.softmax(s, axis=-1)
    oh = jnp.einsum("hqk,hkd->hqd", p, vh).transpose(1, 0, 2).reshape(S, E)
    attn_out = oh @ params["w_o"] + params["b_o"]

    def ln(z, g, b):
        mu = jnp.mean(z, -1, keepdims=True)
        var = jnp.mean((z - mu) ** 2, -1, keepdims=True)
        return (z - mu) / jnp.sqrt(var + 1e-5) * g + b

    x2 = ln(xq + attn_out, params["g1"], params["be1"])
    ff = (jnp.maximum(x2 @ params["w_ff1"] + params["b_ff1"], 0.0)
          @ params["w_ff2"] + params["b_ff2"])
    out = ln(x2 + ff, params["g2"], params["be2"])
    aw = p.mean(axis=0)
    ent = -jnp.sum(aw * jnp.log(aw + 1e-10), axis=-1)
    return out, ent


if __name__ == "__main__":
    EMBED_DIM = 32
    NUM_HEADS = 4
    SEQ = 8
    MEM = 8
    MEM_SIZE = 12   # MEM + SEQ > MEM_SIZE -> exercises the top-k branch

    key = jax.random.PRNGKey(0)
    k_par, k_x, k_m, k_e, k_x2 = jax.random.split(key, 5)

    params = init_params(k_par, EMBED_DIM)
    kparams = prepare_kernel_params(params, NUM_HEADS)

    x = jax.random.normal(k_x, (1, SEQ, EMBED_DIM), jnp.float32)
    mem_x = jax.random.normal(k_m, (MEM, EMBED_DIM), jnp.float32)
    mem_ent = jax.nn.softplus(jax.random.normal(k_e, (MEM,), jnp.float32))

    out, mem_x_new, mem_ent_new, ratio = memory_transformer_layer(
        kparams, x, mem_x, mem_ent, num_heads=NUM_HEADS, mem_size=MEM_SIZE)
    jax.block_until_ready((out, mem_x_new, mem_ent_new, ratio))

    TOL = dict(atol=1e-2, rtol=1e-2)   # bf16 MXU operands vs f32 reference

    # --- correctness: with-memory path (M already a multiple of 8) ---
    ref_out, ref_ent = _ref_forward(
        params, x[0], jnp.concatenate([mem_x, x[0]], axis=0), NUM_HEADS)
    out2d, ent = _run_layer_kernel(kparams, x[0], mem_x, NUM_HEADS)
    assert jnp.allclose(out[0], ref_out, **TOL)
    assert jnp.allclose(out2d, ref_out, **TOL)
    assert jnp.allclose(ent, ref_ent, **TOL)

    # --- correctness: no-memory path ---
    ref_out0, ref_ent0 = _ref_forward(params, x[0], x[0], NUM_HEADS)
    out0, mx0, me0, r0 = memory_transformer_layer(
        kparams, x, None, None, num_heads=NUM_HEADS, mem_size=MEM_SIZE)
    jax.block_until_ready((out0, mx0, me0, r0))
    assert jnp.allclose(out0[0], ref_out0, **TOL)
    assert jnp.allclose(me0, ref_ent0, **TOL)
    assert mx0.shape == (SEQ, EMBED_DIM)

    # --- shapes of the memory update ---
    assert out.shape == (1, SEQ, EMBED_DIM)
    assert mem_x_new.shape == (MEM_SIZE, EMBED_DIM)
    assert mem_ent_new.shape == (MEM_SIZE,)

    # --- chained step 2: memory length 12 (not a multiple of 8) exercises the
    #     padded + masked KV path ---
    x_b = jax.random.normal(k_x2, (1, SEQ, EMBED_DIM), jnp.float32)
    out_b, mem_x_b, mem_ent_b, ratio_b = memory_transformer_layer(
        kparams, x_b, mem_x_new, mem_ent_new, num_heads=NUM_HEADS,
        mem_size=MEM_SIZE)
    jax.block_until_ready((out_b, mem_x_b, mem_ent_b, ratio_b))
    ref_out_b, ref_ent_b = _ref_forward(
        params, x_b[0], jnp.concatenate([mem_x_new, x_b[0]], axis=0), NUM_HEADS)
    out2d_b, ent_b = _run_layer_kernel(kparams, x_b[0], mem_x_new, NUM_HEADS)
    assert jnp.allclose(out_b[0], ref_out_b, **TOL)
    assert jnp.allclose(ent_b, ref_ent_b, **TOL)
    assert mem_x_b.shape == (MEM_SIZE, EMBED_DIM)
    assert mem_ent_b.shape == (MEM_SIZE,)

    print("KERNEL_OK")
</pallas_src>

<mosaic_0001>
module attributes {stable_mosaic.version = 11 : i64} {
  func.func @_mem_transformer_kernel(%arg0: memref<8x32xf32, #tpu.memory_space<vmem>>, %arg1: memref<8x32xf32, #tpu.memory_space<vmem>>, %arg2: memref<32x96xbf16, #tpu.memory_space<vmem>>, %arg3: memref<32x32xbf16, #tpu.memory_space<vmem>>, %arg4: memref<32x128xbf16, #tpu.memory_space<vmem>>, %arg5: memref<128x32xbf16, #tpu.memory_space<vmem>>, %arg6: memref<8x128xf32, #tpu.memory_space<vmem>>, %arg7: memref<8x128xf32, #tpu.memory_space<vmem>>) attributes {dimension_semantics = [], scalar_prefetch = 0 : i64, scratch_operands = 0 : i64, tpu.core_type = #tpu.core_type<tc>} {
    %c0 = arith.constant 0 : index
    %c0_0 = arith.constant 0 : index
    %0 = vector.load %arg0[%c0, %c0_0] : memref<8x32xf32, #tpu.memory_space<vmem>>, vector<8x32xf32>
    %c0_1 = arith.constant 0 : index
    %c0_2 = arith.constant 0 : index
    %1 = vector.load %arg1[%c0_1, %c0_2] : memref<8x32xf32, #tpu.memory_space<vmem>>, vector<8x32xf32>
    %2 = tpu.concatenate %1, %0 in 0 : vector<8x32xf32>, vector<8x32xf32> -> vector<16x32xf32>
    %c0_3 = arith.constant 0 : index
    %c0_4 = arith.constant 0 : index
    %3 = vector.load %arg6[%c0_3, %c0_4] : memref<8x128xf32, #tpu.memory_space<vmem>>, vector<1x96xf32>
    %c1 = arith.constant 1 : index
    %c0_5 = arith.constant 0 : index
    %4 = vector.load %arg6[%c1, %c0_5] : memref<8x128xf32, #tpu.memory_space<vmem>>, vector<1x32xf32>
    %c2 = arith.constant 2 : index
    %c0_6 = arith.constant 0 : index
    %5 = vector.load %arg6[%c2, %c0_6] : memref<8x128xf32, #tpu.memory_space<vmem>>, vector<1x32xf32>
    %c3 = arith.constant 3 : index
    %c0_7 = arith.constant 0 : index
    %6 = vector.load %arg6[%c3, %c0_7] : memref<8x128xf32, #tpu.memory_space<vmem>>, vector<1x32xf32>
    %c4 = arith.constant 4 : index
    %c0_8 = arith.constant 0 : index
    %7 = vector.load %arg6[%c4, %c0_8] : memref<8x128xf32, #tpu.memory_space<vmem>>, vector<1x128xf32>
    %c5 = arith.constant 5 : index
    %c0_9 = arith.constant 0 : index
    %8 = vector.load %arg6[%c5, %c0_9] : memref<8x128xf32, #tpu.memory_space<vmem>>, vector<1x32xf32>
    %c6 = arith.constant 6 : index
    %c0_10 = arith.constant 0 : index
    %9 = vector.load %arg6[%c6, %c0_10] : memref<8x128xf32, #tpu.memory_space<vmem>>, vector<1x32xf32>
    %c7 = arith.constant 7 : index
    %c0_11 = arith.constant 0 : index
    %10 = vector.load %arg6[%c7, %c0_11] : memref<8x128xf32, #tpu.memory_space<vmem>>, vector<1x32xf32>
    %11 = arith.truncf %2 : vector<16x32xf32> to vector<16x32xbf16>
    %c0_12 = arith.constant 0 : index
    %c0_13 = arith.constant 0 : index
    %12 = vector.load %arg2[%c0_12, %c0_13] : memref<32x96xbf16, #tpu.memory_space<vmem>>, vector<32x96xbf16>
    %cst = arith.constant dense<0.000000e+00> : vector<16x96xf32>
    %13 = tpu.matmul %11, %12, %cst {dimension_numbers = #tpu.dot_dimension_numbers<[1], [0], [0], [1], [0, 0, 1, 1], [], []>} : vector<16x32xbf16>, vector<32x96xbf16>, vector<16x96xf32> -> vector<16x96xf32>
    %14 = vector.broadcast %3 : vector<1x96xf32> to vector<16x96xf32>
    %15 = arith.addf %13, %14 : vector<16x96xf32>
    %16 = arith.truncf %15 : vector<16x96xf32> to vector<16x96xbf16>
    %17 = vector.extract_strided_slice %16 {offsets = [8, 0], sizes = [8, 32], strides = [1, 1]} : vector<16x96xbf16> to vector<8x32xbf16>
    %18 = vector.extract_strided_slice %16 {offsets = [0, 32], sizes = [16, 32], strides = [1, 1]} : vector<16x96xbf16> to vector<16x32xbf16>
    %19 = vector.extract_strided_slice %16 {offsets = [0, 64], sizes = [16, 32], strides = [1, 1]} : vector<16x96xbf16> to vector<16x32xbf16>
    %cst_14 = arith.constant 0.000000e+00 : f32
    %20 = vector.broadcast %cst_14 : f32 to vector<8x16xf32>
    %21 = vector.extract_strided_slice %17 {offsets = [0, 0], sizes = [8, 8], strides = [1, 1]} : vector<8x32xbf16> to vector<8x8xbf16>
    %22 = vector.extract_strided_slice %18 {offsets = [0, 0], sizes = [16, 8], strides = [1, 1]} : vector<16x32xbf16> to vector<16x8xbf16>
    %cst_15 = arith.constant dense<0.000000e+00> : vector<8x16xf32>
    %23 = tpu.matmul %21, %22, %cst_15 {dimension_numbers = #tpu.dot_dimension_numbers<[1], [1], [0], [0], [0, 0, 1, 0], [], []>} : vector<8x8xbf16>, vector<16x8xbf16>, vector<8x16xf32> -> vector<8x16xf32>
    %cst_16 = arith.constant dense<0xFF800000> : vector<8xf32>
    %24 = vector.multi_reduction <maximumf>, %23, %cst_16 [1] : vector<8x16xf32> to vector<8xf32>
    %25 = vector.shape_cast %24 : vector<8xf32> to vector<8x1xf32>
    %26 = vector.broadcast %25 : vector<8x1xf32> to vector<8x16xf32>
    %27 = arith.subf %23, %26 : vector<8x16xf32>
    %28 = math.exp %27 : vector<8x16xf32>
    %cst_17 = arith.constant dense<0.000000e+00> : vector<8xf32>
    %29 = vector.multi_reduction <add>, %28, %cst_17 [1] : vector<8x16xf32> to vector<8xf32>
    %30 = vector.shape_cast %29 : vector<8xf32> to vector<8x1xf32>
    %31 = tpu.reciprocal %30 : vector<8x1xf32> -> vector<8x1xf32>
    %32 = vector.broadcast %31 : vector<8x1xf32> to vector<8x16xf32>
    %33 = arith.mulf %28, %32 : vector<8x16xf32>
    %34 = arith.addf %20, %33 : vector<8x16xf32>
    %35 = arith.truncf %33 : vector<8x16xf32> to vector<8x16xbf16>
    %36 = vector.extract_strided_slice %19 {offsets = [0, 0], sizes = [16, 8], strides = [1, 1]} : vector<16x32xbf16> to vector<16x8xbf16>
    %cst_18 = arith.constant dense<0.000000e+00> : vector<8x8xf32>
    %37 = tpu.matmul %35, %36, %cst_18 {dimension_numbers = #tpu.dot_dimension_numbers<[1], [0], [0], [1], [0, 0, 1, 1], [], []>} : vector<8x16xbf16>, vector<16x8xbf16>, vector<8x8xf32> -> vector<8x8xf32>
    %38 = vector.extract_strided_slice %17 {offsets = [0, 8], sizes = [8, 8], strides = [1, 1]} : vector<8x32xbf16> to vector<8x8xbf16>
    %39 = vector.extract_strided_slice %18 {offsets = [0, 8], sizes = [16, 8], strides = [1, 1]} : vector<16x32xbf16> to vector<16x8xbf16>
    %cst_19 = arith.constant dense<0.000000e+00> : vector<8x16xf32>
    %40 = tpu.matmul %38, %39, %cst_19 {dimension_numbers = #tpu.dot_dimension_numbers<[1], [1], [0], [0], [0, 0, 1, 0], [], []>} : vector<8x8xbf16>, vector<16x8xbf16>, vector<8x16xf32> -> vector<8x16xf32>
    %cst_20 = arith.constant dense<0xFF800000> : vector<8xf32>
    %41 = vector.multi_reduction <maximumf>, %40, %cst_20 [1] : vector<8x16xf32> to vector<8xf32>
    %42 = vector.shape_cast %41 : vector<8xf32> to vector<8x1xf32>
    %43 = vector.broadcast %42 : vector<8x1xf32> to vector<8x16xf32>
    %44 = arith.subf %40, %43 : vector<8x16xf32>
    %45 = math.exp %44 : vector<8x16xf32>
    %cst_21 = arith.constant dense<0.000000e+00> : vector<8xf32>
    %46 = vector.multi_reduction <add>, %45, %cst_21 [1] : vector<8x16xf32> to vector<8xf32>
    %47 = vector.shape_cast %46 : vector<8xf32> to vector<8x1xf32>
    %48 = tpu.reciprocal %47 : vector<8x1xf32> -> vector<8x1xf32>
    %49 = vector.broadcast %48 : vector<8x1xf32> to vector<8x16xf32>
    %50 = arith.mulf %45, %49 : vector<8x16xf32>
    %51 = arith.addf %34, %50 : vector<8x16xf32>
    %52 = arith.truncf %50 : vector<8x16xf32> to vector<8x16xbf16>
    %53 = vector.extract_strided_slice %19 {offsets = [0, 8], sizes = [16, 8], strides = [1, 1]} : vector<16x32xbf16> to vector<16x8xbf16>
    %cst_22 = arith.constant dense<0.000000e+00> : vector<8x8xf32>
    %54 = tpu.matmul %52, %53, %cst_22 {dimension_numbers = #tpu.dot_dimension_numbers<[1], [0], [0], [1], [0, 0, 1, 1], [], []>} : vector<8x16xbf16>, vector<16x8xbf16>, vector<8x8xf32> -> vector<8x8xf32>
    %55 = vector.extract_strided_slice %17 {offsets = [0, 16], sizes = [8, 8], strides = [1, 1]} : vector<8x32xbf16> to vector<8x8xbf16>
    %56 = vector.extract_strided_slice %18 {offsets = [0, 16], sizes = [16, 8], strides = [1, 1]} : vector<16x32xbf16> to vector<16x8xbf16>
    %cst_23 = arith.constant dense<0.000000e+00> : vector<8x16xf32>
    %57 = tpu.matmul %55, %56, %cst_23 {dimension_numbers = #tpu.dot_dimension_numbers<[1], [1], [0], [0], [0, 0, 1, 0], [], []>} : vector<8x8xbf16>, vector<16x8xbf16>, vector<8x16xf32> -> vector<8x16xf32>
    %cst_24 = arith.constant dense<0xFF800000> : vector<8xf32>
    %58 = vector.multi_reduction <maximumf>, %57, %cst_24 [1] : vector<8x16xf32> to vector<8xf32>
    %59 = vector.shape_cast %58 : vector<8xf32> to vector<8x1xf32>
    %60 = vector.broadcast %59 : vector<8x1xf32> to vector<8x16xf32>
    %61 = arith.subf %57, %60 : vector<8x16xf32>
    %62 = math.exp %61 : vector<8x16xf32>
    %cst_25 = arith.constant dense<0.000000e+00> : vector<8xf32>
    %63 = vector.multi_reduction <add>, %62, %cst_25 [1] : vector<8x16xf32> to vector<8xf32>
    %64 = vector.shape_cast %63 : vector<8xf32> to vector<8x1xf32>
    %65 = tpu.reciprocal %64 : vector<8x1xf32> -> vector<8x1xf32>
    %66 = vector.broadcast %65 : vector<8x1xf32> to vector<8x16xf32>
    %67 = arith.mulf %62, %66 : vector<8x16xf32>
    %68 = arith.addf %51, %67 : vector<8x16xf32>
    %69 = arith.truncf %67 : vector<8x16xf32> to vector<8x16xbf16>
    %70 = vector.extract_strided_slice %19 {offsets = [0, 16], sizes = [16, 8], strides = [1, 1]} : vector<16x32xbf16> to vector<16x8xbf16>
    %cst_26 = arith.constant dense<0.000000e+00> : vector<8x8xf32>
    %71 = tpu.matmul %69, %70, %cst_26 {dimension_numbers = #tpu.dot_dimension_numbers<[1], [0], [0], [1], [0, 0, 1, 1], [], []>} : vector<8x16xbf16>, vector<16x8xbf16>, vector<8x8xf32> -> vector<8x8xf32>
    %72 = vector.extract_strided_slice %17 {offsets = [0, 24], sizes = [8, 8], strides = [1, 1]} : vector<8x32xbf16> to vector<8x8xbf16>
    %73 = vector.extract_strided_slice %18 {offsets = [0, 24], sizes = [16, 8], strides = [1, 1]} : vector<16x32xbf16> to vector<16x8xbf16>
    %cst_27 = arith.constant dense<0.000000e+00> : vector<8x16xf32>
    %74 = tpu.matmul %72, %73, %cst_27 {dimension_numbers = #tpu.dot_dimension_numbers<[1], [1], [0], [0], [0, 0, 1, 0], [], []>} : vector<8x8xbf16>, vector<16x8xbf16>, vector<8x16xf32> -> vector<8x16xf32>
    %cst_28 = arith.constant dense<0xFF800000> : vector<8xf32>
    %75 = vector.multi_reduction <maximumf>, %74, %cst_28 [1] : vector<8x16xf32> to vector<8xf32>
    %76 = vector.shape_cast %75 : vector<8xf32> to vector<8x1xf32>
    %77 = vector.broadcast %76 : vector<8x1xf32> to vector<8x16xf32>
    %78 = arith.subf %74, %77 : vector<8x16xf32>
    %79 = math.exp %78 : vector<8x16xf32>
    %cst_29 = arith.constant dense<0.000000e+00> : vector<8xf32>
    %80 = vector.multi_reduction <add>, %79, %cst_29 [1] : vector<8x16xf32> to vector<8xf32>
    %81 = vector.shape_cast %80 : vector<8xf32> to vector<8x1xf32>
    %82 = tpu.reciprocal %81 : vector<8x1xf32> -> vector<8x1xf32>
    %83 = vector.broadcast %82 : vector<8x1xf32> to vector<8x16xf32>
    %84 = arith.mulf %79, %83 : vector<8x16xf32>
    %85 = arith.addf %68, %84 : vector<8x16xf32>
    %86 = arith.truncf %84 : vector<8x16xf32> to vector<8x16xbf16>
    %87 = vector.extract_strided_slice %19 {offsets = [0, 24], sizes = [16, 8], strides = [1, 1]} : vector<16x32xbf16> to vector<16x8xbf16>
    %cst_30 = arith.constant dense<0.000000e+00> : vector<8x8xf32>
    %88 = tpu.matmul %86, %87, %cst_30 {dimension_numbers = #tpu.dot_dimension_numbers<[1], [0], [0], [1], [0, 0, 1, 1], [], []>} : vector<8x16xbf16>, vector<16x8xbf16>, vector<8x8xf32> -> vector<8x8xf32>
    %89 = tpu.concatenate %37, %54, %71, %88 in 1 : vector<8x8xf32>, vector<8x8xf32>, vector<8x8xf32>, vector<8x8xf32> -> vector<8x32xf32>
    %90 = arith.truncf %89 : vector<8x32xf32> to vector<8x32xbf16>
    %c0_31 = arith.constant 0 : index
    %c0_32 = arith.constant 0 : index
    %91 = vector.load %arg3[%c0_31, %c0_32] : memref<32x32xbf16, #tpu.memory_space<vmem>>, vector<32x32xbf16>
    %cst_33 = arith.constant dense<0.000000e+00> : vector<8x32xf32>
    %92 = tpu.matmul %90, %91, %cst_33 {dimension_numbers = #tpu.dot_dimension_numbers<[1], [0], [0], [1], [0, 0, 1, 1], [], []>} : vector<8x32xbf16>, vector<32x32xbf16>, vector<8x32xf32> -> vector<8x32xf32>
    %93 = vector.broadcast %4 : vector<1x32xf32> to vector<8x32xf32>
    %94 = arith.addf %92, %93 : vector<8x32xf32>
    %95 = arith.addf %0, %94 : vector<8x32xf32>
    %cst_34 = arith.constant dense<0.000000e+00> : vector<8xf32>
    %96 = vector.multi_reduction <add>, %95, %cst_34 [1] : vector<8x32xf32> to vector<8xf32>
    %97 = vector.shape_cast %96 : vector<8xf32> to vector<8x1xf32>
    %cst_35 = arith.constant 3.200000e+01 : f32
    %98 = vector.broadcast %cst_35 : f32 to vector<8x1xf32>
    %99 = arith.divf %97, %98 : vector<8x1xf32>
    %100 = vector.broadcast %99 : vector<8x1xf32> to vector<8x32xf32>
    %101 = arith.subf %95, %100 : vector<8x32xf32>
    %102 = arith.mulf %101, %101 : vector<8x32xf32>
    %cst_36 = arith.constant dense<0.000000e+00> : vector<8xf32>
    %103 = vector.multi_reduction <add>, %102, %cst_36 [1] : vector<8x32xf32> to vector<8xf32>
    %104 = vector.shape_cast %103 : vector<8xf32> to vector<8x1xf32>
    %cst_37 = arith.constant 3.200000e+01 : f32
    %105 = vector.broadcast %cst_37 : f32 to vector<8x1xf32>
    %106 = arith.divf %104, %105 : vector<8x1xf32>
    %107 = vector.broadcast %99 : vector<8x1xf32> to vector<8x32xf32>
    %108 = arith.subf %95, %107 : vector<8x32xf32>
    %cst_38 = arith.constant 9.99999974E-6 : f32
    %109 = vector.broadcast %cst_38 : f32 to vector<8x1xf32>
    %110 = arith.addf %106, %109 : vector<8x1xf32>
    %111 = math.rsqrt %110 : vector<8x1xf32>
    %112 = vector.broadcast %111 : vector<8x1xf32> to vector<8x32xf32>
    %113 = arith.mulf %108, %112 : vector<8x32xf32>
    %114 = vector.broadcast %5 : vector<1x32xf32> to vector<8x32xf32>
    %115 = arith.mulf %113, %114 : vector<8x32xf32>
    %116 = vector.broadcast %6 : vector<1x32xf32> to vector<8x32xf32>
    %117 = arith.addf %115, %116 : vector<8x32xf32>
    %118 = arith.truncf %117 : vector<8x32xf32> to vector<8x32xbf16>
    %c0_39 = arith.constant 0 : index
    %c0_40 = arith.constant 0 : index
    %119 = vector.load %arg4[%c0_39, %c0_40] : memref<32x128xbf16, #tpu.memory_space<vmem>>, vector<32x128xbf16>
    %cst_41 = arith.constant dense<0.000000e+00> : vector<8x128xf32>
    %120 = tpu.matmul %118, %119, %cst_41 {dimension_numbers = #tpu.dot_dimension_numbers<[1], [0], [0], [1], [0, 0, 1, 1], [], []>} : vector<8x32xbf16>, vector<32x128xbf16>, vector<8x128xf32> -> vector<8x128xf32>
    %121 = vector.broadcast %7 : vector<1x128xf32> to vector<8x128xf32>
    %122 = arith.addf %120, %121 : vector<8x128xf32>
    %cst_42 = arith.constant 0.000000e+00 : f32
    %123 = vector.broadcast %cst_42 : f32 to vector<8x128xf32>
    %124 = arith.maximumf %122, %123 : vector<8x128xf32>
    %125 = arith.truncf %124 : vector<8x128xf32> to vector<8x128xbf16>
    %c0_43 = arith.constant 0 : index
    %c0_44 = arith.constant 0 : index
    %126 = vector.load %arg5[%c0_43, %c0_44] : memref<128x32xbf16, #tpu.memory_space<vmem>>, vector<128x32xbf16>
    %cst_45 = arith.constant dense<0.000000e+00> : vector<8x32xf32>
    %127 = tpu.matmul %125, %126, %cst_45 {dimension_numbers = #tpu.dot_dimension_numbers<[1], [0], [0], [1], [0, 0, 1, 1], [], []>} : vector<8x128xbf16>, vector<128x32xbf16>, vector<8x32xf32> -> vector<8x32xf32>
    %128 = vector.broadcast %8 : vector<1x32xf32> to vector<8x32xf32>
    %129 = arith.addf %127, %128 : vector<8x32xf32>
    %130 = arith.addf %117, %129 : vector<8x32xf32>
    %cst_46 = arith.constant dense<0.000000e+00> : vector<8xf32>
    %131 = vector.multi_reduction <add>, %130, %cst_46 [1] : vector<8x32xf32> to vector<8xf32>
    %132 = vector.shape_cast %131 : vector<8xf32> to vector<8x1xf32>
    %cst_47 = arith.constant 3.200000e+01 : f32
    %133 = vector.broadcast %cst_47 : f32 to vector<8x1xf32>
    %134 = arith.divf %132, %133 : vector<8x1xf32>
    %135 = vector.broadcast %134 : vector<8x1xf32> to vector<8x32xf32>
    %136 = arith.subf %130, %135 : vector<8x32xf32>
    %137 = arith.mulf %136, %136 : vector<8x32xf32>
    %cst_48 = arith.constant dense<0.000000e+00> : vector<8xf32>
    %138 = vector.multi_reduction <add>, %137, %cst_48 [1] : vector<8x32xf32> to vector<8xf32>
    %139 = vector.shape_cast %138 : vector<8xf32> to vector<8x1xf32>
    %cst_49 = arith.constant 3.200000e+01 : f32
    %140 = vector.broadcast %cst_49 : f32 to vector<8x1xf32>
    %141 = arith.divf %139, %140 : vector<8x1xf32>
    %142 = vector.broadcast %134 : vector<8x1xf32> to vector<8x32xf32>
    %143 = arith.subf %130, %142 : vector<8x32xf32>
    %cst_50 = arith.constant 9.99999974E-6 : f32
    %144 = vector.broadcast %cst_50 : f32 to vector<8x1xf32>
    %145 = arith.addf %141, %144 : vector<8x1xf32>
    %146 = math.rsqrt %145 : vector<8x1xf32>
    %147 = vector.broadcast %146 : vector<8x1xf32> to vector<8x32xf32>
    %148 = arith.mulf %143, %147 : vector<8x32xf32>
    %149 = vector.broadcast %9 : vector<1x32xf32> to vector<8x32xf32>
    %150 = arith.mulf %148, %149 : vector<8x32xf32>
    %151 = vector.broadcast %10 : vector<1x32xf32> to vector<8x32xf32>
    %152 = arith.addf %150, %151 : vector<8x32xf32>
    %cst_51 = arith.constant 2.500000e-01 : f32
    %153 = vector.broadcast %cst_51 : f32 to vector<8x16xf32>
    %154 = arith.mulf %85, %153 : vector<8x16xf32>
    %cst_52 = arith.constant 1.000000e-10 : f32
    %155 = vector.broadcast %cst_52 : f32 to vector<8x16xf32>
    %156 = arith.addf %154, %155 : vector<8x16xf32>
    %157 = math.log %156 : vector<8x16xf32>
    %158 = arith.mulf %154, %157 : vector<8x16xf32>
    %cst_53 = arith.constant dense<0.000000e+00> : vector<8xf32>
    %159 = vector.multi_reduction <add>, %158, %cst_53 [1] : vector<8x16xf32> to vector<8xf32>
    %160 = vector.shape_cast %159 : vector<8xf32> to vector<8x1xf32>
    %cst_54 = arith.constant 0.000000e+00 : f32
    %161 = vector.broadcast %cst_54 : f32 to vector<8x1xf32>
    %162 = arith.subf %161, %160 : vector<8x1xf32>
    %163 = vector.shape_cast %162 : vector<8x1xf32> to vector<8x1xf32>
    %164 = vector.broadcast %163 : vector<8x1xf32> to vector<8x96xf32>
    %165 = tpu.concatenate %152, %164 in 1 : vector<8x32xf32>, vector<8x96xf32> -> vector<8x128xf32>
    %c0_55 = arith.constant 0 : index
    %c0_56 = arith.constant 0 : index
    %166 = vector.load %arg7[%c0_55, %c0_56] : memref<8x128xf32, #tpu.memory_space<vmem>>, vector<8x128xf32>
    tpu.vector_store %arg7[%c0_55, %c0_56], %165 {strides = array<i32>} : memref<8x128xf32, #tpu.memory_space<vmem>>, vector<8x128xf32>,
    return
  }
}

</mosaic_0001>

<bundles_post_ra>
// kernel: tpu_custom_call.1
= control target key start
LH: loop header
LB: loop body
LE: loop exit
PB: predicated region body
PF: predicated region fallthrough
CT: control target
= control target key end

     0   :  { %v1107_v1 = vmov 0.0   ;;  %vm1108_vm0 = vmmov 0   ;;  %vm59_vm1 = vcmask 261120   ;;  %s1340_s0 = inlined_call_operand.vmem [shape: f32[8,32], index: 0, kind: input, shape index: {}]   ;;  %s1341_s1 = inlined_call_operand.vmem [shape: f32[8,32], index: 1, kind: input, shape index: {}]   ;;  %s1342_s2 = inlined_call_operand.vmem [shape: bf16[32,96], index: 2, kind: input, shape index: {}]   ;;  %s1343_s3 = inlined_call_operand.vmem [shape: bf16[32,32], index: 3, kind: input, shape index: {}]   ;;  %s1344_s4 = inlined_call_operand.vmem [shape: bf16[32,128], index: 4, kind: input, shape index: {}]   ;;  %s1345_s5 = inlined_call_operand.vmem [shape: bf16[128,32], index: 5, kind: input, shape index: {}]   ;;  %s1346_s6 = inlined_call_operand.vmem [shape: f32[8,128], index: 6, kind: input, shape index: {}]   ;;  %s1347_s7 = inlined_call_operand.hbm [shape: f32[8,128], index: 7, kind: output, shape index: {}]  }
   0x1   :  { %v1047_v0 = vld [vmem:[%s1342_s2] sm:$0xff]   ;;  %938 = vmatprep.subr.bf16.mxu0 %v1107_v1  ;;  %958 = vmatprep.subr.bf16.mxu1 %v1107_v1  ;;  %v1048_v2 = vld [vmem:[%s1342_s2 + $0x8] sm:$0xff]  }
   0x2   :  { %939 = vmatpush3.bf16.msra.mxu0 %v1047_v0  ;;  %942 = vmatprep.mubr.msk.bf16.mxu0 %vm1108_vm0, %v1107_v1  ;;  %v1177_v3 = vld [vmem:[%s1340_s0] sm:$0xff] }
   0x3   :  { %v29_v4 = vld [vmem:[%s1341_s1] sm:$0xff]  ;;  %940 = vmatprep.subr.bf16.mxu0 %v1107_v1  ;;  %960 = vmatprep.mubr.msk.bf16.mxu1 %vm1108_vm0, %v1107_v1 }
   0x4   :  { %v38_v5 = vpack.c.bf16 %v1177_v3, %v29_v4 }
   0x6   :  { %941 = vmatpush3.bf16.msra.mxu0 %v1048_v2 }
   0x7   :  { %946 = vmatprep.subr.bf16.mxu0 %v1107_v1 }
   0x9   :  { %943 = vmatmul.mubr.msk.bf16.vlgmr.msra.gmra.mrb[0].mxu0 %vm59_vm1, %v38_v5 }
   0xa   :  { %948 = vmatprep.mubr.msk.bf16.mxu0 %vm1108_vm0, %v1107_v1 }
   0xb   :  { %12 = vsyncpa [#allocation3], 0  ;;  %v871_v6 = vld [vmem:[%s1346_s6] ss:$0 sm:$0xff]  ;;  %s1109_s1 = smov 96   ;;  %s1110_s9 = smov 120  }
   0xc   :  { %s1111_s10 = smov 88   ;;  %s1112_s11 = smov 80   ;;  %vm109_vm2 = vcmask 64512   ;;  %vm156_vm3 = vcmask 130048   ;;  %vm557_vm4 = vcmask 195584  }
   0xd   :  { %s1113_s12 = smov 112   ;;  %s1114_s13 = smov 72  }
   0xe   :  { %s1115_s14 = smov 104   ;;  %s1116_s15 = smov 56  }
   0xf   :  { %s1117_s16 = smov 64   ;;  %s1118_s17 = smov 40  }
  0x10   :  { %s1119_s18 = smov 48   ;;  %s1120_s19 = smov 8  }
  0x11   :  { %s1121_s24 = smov 16   ;;  %s1122_s25 = smov 24  }
  0x12   :  { %s1123_s30 = smov [#allocation2]  }
  0x13   :  { %s863_s8 = sshll.u32 %s1123_s30, 4  ;;  %s864_s8 = int_to_ptr.vmem [resolvable:$true] %s863_s8 }
  0x14   :  { %s1083_s0 = scalar_lea.vmem %s864_s8, 128  ;;  %p1088_p1 = scmp.lt.s32.totalorder %s864_s8, %s864_s8 }
  0x15   :  { %p1084_p0 = scmp.ne.s32.totalorder %s864_s8, %s1083_s0  ;;  %p1089_p2 = scmp.lt.s32.totalorder %s1083_s0, %s1083_s0 }
  0x17   :  { %p1090_p3 = por %p1089_p2, %p1088_p1 }
  0x19   :  { %p1091_p4 = pnand %p1090_p3, %p1084_p0 }
  0xdc   :  { %v97_v7 = vpop.f32.mrb[0].mxu0 }
  0xdd   :  { %v944_v8 = vpop.f32.mrb[1].mxu0  ;;  %v98_v10 = vadd.f32 %v871_v6, %v97_v7 }
  0xde   :  { %v100_v9 = vpop.f32.mrb[2].mxu0 }
  0xdf   :  { %v101_v11 = vadd.f32 %v871_v6, %v100_v9  ;;  %v945_v12 = vpop.f32.mrb[3].mxu0 }
  0xe1   :  { %v1193_v13 = vpack.c.bf16 %v101_v11, %v98_v10 }
  0xe3   :  { %107 = vrot.lane.b32.xlu0 %v1193_v13, %s1109_s1  ;;  %v106_v14 = vrot.slane %v1193_v13, 4 }
  0xe5   :  { %216 = vrot.lane.b32.xlu1 %v106_v14, %s1110_s9 }
  0xe7   :  { %218 = vrot.lane.b32.xlu0 %v1193_v13, %s1111_s10 }
  0xe9   :  { %327 = vrot.lane.b32.xlu1 %v1193_v13, %s1112_s11 }
  0xeb   :  { %325 = vrot.lane.b32.xlu0 %v106_v14, %s1113_s12 }
  0xed   :  { %436 = vrot.lane.b32.xlu1 %v1193_v13, %s1114_s13 }
  0xef   :  { %434 = vrot.lane.b32.xlu0 %v106_v14, %s1115_s14 }
 0x155   :  { %v108_v15 = vpop.permute.xlu0 %107 }
 0x156   :  { %v114_v16 = vsel %vm109_vm2, %v108_v15, 0 }
 0x157   :  { %947 = vmatpush3.bf16.xpose.msra.mxu0 %v114_v16  ;;  %v217_v17 = vpop.permute.xlu1 %216 }
 0x158   :  { %952 = vmatprep.subr.bf16.mxu0 %v1107_v1 }
 0x159   :  { %v219_v18 = vpop.permute.xlu0 %218 }
 0x15a   :  { %v224_v19 = vsel %vm109_vm2, %v219_v18, 0 }
 0x15b   :  { %959 = vmatpush3.bf16.xpose.msra.mxu1 %v224_v19  ;;  %v328_v20 = vpop.permute.xlu1 %327 }
 0x15c   :  { %970 = vmatprep.subr.bf16.mxu1 %v1107_v1  ;;  %v333_v21 = vsel %vm109_vm2, %v328_v20, 0 }
 0x15d   :  { %v326_v23 = vpop.permute.xlu0 %325 }
 0x15e   :  { %949 = vmatmul.mubr.msk.bf16.vlgmr.msra.gmra.mrb[4].mxu0 %vm109_vm2, %v106_v14 }
 0x15f   :  { %954 = vmatprep.mubr.msk.bf16.mxu0 %vm1108_vm0, %v1107_v1  ;;  %v437_v22 = vpop.permute.xlu1 %436 }
 0x160   :  { %v442_v24 = vsel %vm109_vm2, %v437_v22, 0 }
 0x161   :  { %v435_v25 = vpop.permute.xlu0 %434 }
 0x162   :  { %961 = vmatmul.mubr.msk.bf16.vlgmr.msra.gmra.mrb[0].mxu1 %vm109_vm2, %v217_v17 }
 0x163   :  { %971 = vmatpush3.bf16.xpose.msra.mxu1 %v333_v21  ;;  %972 = vmatprep.mubr.msk.bf16.mxu1 %vm1108_vm0, %v1107_v1 }
 0x164   :  { %982 = vmatprep.subr.bf16.mxu1 %v1107_v1 }
 0x16a   :  { %973 = vmatmul.mubr.msk.bf16.vlgmr.msra.gmra.mrb[4].mxu1 %vm109_vm2, %v326_v23 }
 0x16b   :  { %983 = vmatpush3.bf16.xpose.msra.mxu1 %v442_v24  ;;  %984 = vmatprep.mubr.msk.bf16.mxu1 %vm1108_vm0, %v1107_v1 }
 0x16c   :  { %994 = vmatprep.subr.bf16.mxu1 %v1107_v1 }
 0x172   :  { %985 = vmatmul.mubr.msk.bf16.vlgmr.msra.gmra.mrb[8].mxu1 %vm109_vm2, %v435_v25 }
 0x173   :  { %998 = vmatprep.mubr.msk.bf16.mxu1 %vm1108_vm0, %v1107_v1 }
 0x231   :  { %v150_v26 = vpop.f32.mrb[4].mxu0 }
 0x232   :  { %v950_v27 = vpop.f32.mrb[5].mxu0  ;;  %v157_v28 = vsel %vm156_vm3, %v150_v26, -inf }
 0x233   :  { %158 = vmax.xlane.f32.xlu1 %v157_v28  ;;  %v153_v29 = vpop.f32.mrb[6].mxu0 }
 0x234   :  { %v951_v30 = vpop.f32.mrb[7].mxu0 }
 0x235   :  { %v260_v31 = vpop.f32.mrb[0].mxu1 }
 0x236   :  { %v962_v32 = vpop.f32.mrb[1].mxu1  ;;  %v266_v33 = vsel %vm156_vm3, %v260_v31, -inf }
 0x237   :  { %267 = vmax.xlane.f32.xlu0 %v266_v33  ;;  %v263_v34 = vpop.f32.mrb[2].mxu1 }
 0x238   :  { %v963_v35 = vpop.f32.mrb[3].mxu1 }
 0x239   :  { %v1049_v35 = vld [vmem:[%s1343_s3] sm:$0xff]  }
 0x23a   :  { %995 = vmatpush3.bf16.msra.mxu1 %v1049_v35 }
 0x23b   :  { %996 = vmatprep.subr.bf16.mxu1 %v1107_v1 }
 0x23d   :  { %v369_v36 = vpop.f32.mrb[4].mxu1 }
 0x23e   :  { %v974_v37 = vpop.f32.mrb[5].mxu1  ;;  %v375_v38 = vsel %vm156_vm3, %v369_v36, -inf }
 0x23f   :  { %376 = vmax.xlane.f32.xlu0 %v375_v38  ;;  %v372_v39 = vpop.f32.mrb[6].mxu1 }
 0x240   :  { %v975_v40 = vpop.f32.mrb[7].mxu1 }
 0x245   :  { %v478_v41 = vpop.f32.mrb[8].mxu1 }
 0x246   :  { %v986_v42 = vpop.f32.mrb[9].mxu1  ;;  %v484_v43 = vsel %vm156_vm3, %v478_v41, -inf }
 0x247   :  { %v481_v44 = vpop.f32.mrb[10].mxu1  ;;  %485 = vmax.xlane.f32.xlu1 %v484_v43 }
 0x248   :  { %v987_v45 = vpop.f32.mrb[11].mxu1 }
 0x2c0   :  { %v159_v46 = vpop.xlane.xlu1 %158 }
 0x2c1   :  { %v160_v47 = vsub.f32 %v150_v26, %v159_v46 }
 0x2c3   :  { %v161_v48 = vmul.f32 1.442695, %v160_v47 }
 0x2c4   :  { %v268_v49 = vpop.xlane.xlu0 %267 }
 0x2c5   :  { %1061 = vpow2.f32 %v161_v48  ;;  %v269_v50 = vsub.f32 %v260_v31, %v268_v49 }
 0x2c7   :  { %v270_v51 = vmul.f32 1.442695, %v269_v50 }
 0x2c9   :  { %1063 = vpow2.f32 %v270_v51 }
 0x2cc   :  { %v377_v52 = vpop.xlane.xlu0 %376 }
 0x2cd   :  { %v378_v53 = vsub.f32 %v369_v36, %v377_v52  ;;  %v1050_v36 = vld [vmem:[%s1343_s3 + $0x8] sm:$0xff]   ;;  %v883_v52 = vld [vmem:[%s1346_s6 + $0x1] ss:$0 sm:$0xff] }
 0x2ce   :  { %997 = vmatpush3.bf16.msra.mxu1 %v1050_v36 }
 0x2cf   :  { %v1062_v54 = vpop.eup %1061  ;;  %v379_v55 = vmul.f32 1.442695, %v378_v53  ;;  %1010 = vmatprep.subr.bf16.mxu1 %v1107_v1 }
 0x2d0   :  { %v163_v56 = vsel %vm156_vm3, %v1062_v54, 0.0 }
 0x2d1   :  { %1065 = vpow2.f32 %v379_v55  ;;  %164 = vadd.xlane.f32.xlu0 %v163_v56 }
 0x2d3   :  { %v1064_v57 = vpop.eup %1063 }
 0x2d4   :  { %v272_v58 = vsel %vm156_vm3, %v1064_v57, 0.0  ;;  %v486_v61 = vpop.xlane.xlu1 %485 }
 0x2d5   :  { %273 = vadd.xlane.f32.xlu1 %v272_v58  ;;  %v487_v62 = vsub.f32 %v478_v41, %v486_v61 }
 0x2d7   :  { %v488_v63 = vmul.f32 1.442695, %v487_v62 }
 0x2d9   :  { %1067 = vpow2.f32 %v488_v63 }
 0x2db   :  { %v1066_v59 = vpop.eup %1065 }
 0x2dc   :  { %v381_v60 = vsel %vm156_vm3, %v1066_v59, 0.0 }
 0x2dd   :  { %382 = vadd.xlane.f32.xlu0 %v381_v60 }
 0x2e3   :  { %v1068_v0 = vpop.eup %1067 }
 0x2e4   :  { %v490_v2 = vsel %vm156_vm3, %v1068_v0, 0.0 }
 0x2e6   :  { %279 = vrot.lane.b32.xlu1 %v1193_v13, %s1116_s15 }
 0x2f3   :  { %170 = vrot.lane.b32.xlu0 %v1193_v13, %s1117_s16 }
 0x2f7   :  { %497 = vrot.lane.b32.xlu0 %v1193_v13, %s1118_s17 }
 0x30a   :  { %491 = vadd.xlane.f32.xlu1 %v490_v2 }
 0x31b   :  { %388 = vrot.lane.b32.xlu1 %v1193_v13, %s1119_s18 }
 0x35e   :  { %v165_v4 = vpop.xlane.xlu0 %164 }
 0x35f   :  { %1069 = vrcp.f32 %v165_v4 }
 0x362   :  { %v274_v5 = vpop.xlane.xlu1 %273 }
 0x363   :  { %1071 = vrcp.f32 %v274_v5 }
 0x366   :  { %v280_v15 = vpop.permute.xlu1 %279 }
 0x369   :  { %v1070_v6 = vpop.eup %1069 }
 0x36a   :  { %v383_v7 = vpop.xlane.xlu0 %382  ;;  %v167_v8 = vmul.f32 %v1070_v6, %v1062_v54 }
 0x36b   :  { %1073 = vrcp.f32 %v383_v7 }
 0x36c   :  { %v169_v12 = vpack.c.bf16 %v167_v8, %v167_v8 }
 0x36d   :  { %v1072_v9 = vpop.eup %1071 }
 0x36e   :  { %v276_v10 = vmul.f32 %v1072_v9, %v1064_v57  ;;  %v171_v11 = vpop.permute.xlu0 %170  ;;  %v1052_v9 = vld [vmem:[%s1344_s4 + $0x8] sm:$0xff]  }
 0x36f   :  { %953 = vmatpush3.bf16.msra.mxu0 %v171_v11  ;;  %v1054_v11 = vld [vmem:[%s1345_s5 + $0x8] sm:$0xff]  }
 0x370   :  { %964 = vmatprep.subr.bf16.mxu0 %v1107_v1  ;;  %v277_v14 = vadd.f32 %v276_v10, %v167_v8  ;;  %v278_v17 = vpack.c.bf16 %v276_v10, %v276_v10  ;;  %v1053_v10 = vld [vmem:[%s1345_s5] sm:$0xff]  }
 0x372   :  { %955 = vmatmul.mubr.msk.bf16.vlgmr.msra.gmra.mrb[8].mxu0 %vm156_vm3, %v169_v12  ;;  %v498_v22 = vpop.permute.xlu0 %497  ;;  %v1055_v12 = vld [vmem:[%s1345_s5 + $0x10] sm:$0xff]  }
 0x373   :  { %965 = vmatpush3.bf16.msra.mxu0 %v280_v15  ;;  %966 = vmatprep.mubr.msk.bf16.mxu0 %vm1108_vm0, %v1107_v1  ;;  %v1057_v15 = vld [vmem:[%s1345_s5 + $0x20] sm:$0xff]  }
 0x374   :  { %976 = vmatprep.subr.bf16.mxu0 %v1107_v1 }
 0x375   :  { %v1074_v13 = vpop.eup %1073 }
 0x376   :  { %v385_v16 = vmul.f32 %v1074_v13, %v1066_v59  ;;  %v1058_v13 = vld [vmem:[%s1345_s5 + $0x28] sm:$0xff]  }
 0x378   :  { %v386_v18 = vadd.f32 %v385_v16, %v277_v14  ;;  %v387_v21 = vpack.c.bf16 %v385_v16, %v385_v16  ;;  %v1056_v14 = vld [vmem:[%s1345_s5 + $0x18] sm:$0xff]  }
 0x37a   :  { %967 = vmatmul.mubr.msk.bf16.vlgmr.msra.gmra.mrb[12].mxu0 %vm156_vm3, %v278_v17 }
 0x37b   :  { %978 = vmatprep.mubr.msk.bf16.mxu0 %vm1108_vm0, %v1107_v1 }
 0x397   :  { %v492_v19 = vpop.xlane.xlu1 %491 }
 0x398   :  { %1075 = vrcp.f32 %v492_v19 }
 0x39b   :  { %v389_v20 = vpop.permute.xlu1 %388 }
 0x39c   :  { %977 = vmatpush3.bf16.msra.mxu0 %v389_v20  ;;  %v887_v20 = vld [vmem:[%s1346_s6 + $0x2] ss:$0 sm:$0xff] }
 0x39d   :  { %988 = vmatprep.subr.bf16.mxu0 %v1107_v1 }
 0x39f   :  { %979 = vmatmul.mubr.msk.bf16.vlgmr.msra.gmra.mrb[16].mxu0 %vm156_vm3, %v387_v21 }
 0x3a0   :  { %989 = vmatpush3.bf16.msra.mxu0 %v498_v22  ;;  %990 = vmatprep.mubr.msk.bf16.mxu0 %vm1108_vm0, %v1107_v1  ;;  %v888_v22 = vld [vmem:[%s1346_s6 + $0x3] ss:$0 sm:$0xff] }
 0x3a1   :  { %1002 = vmatprep.subr.bf16.mxu0 %v1107_v1 }
 0x3a2   :  { %v1076_v23 = vpop.eup %1075 }
 0x3a3   :  { %v494_v24 = vmul.f32 %v1076_v23, %v1068_v0 }
 0x3a5   :  { %v496_v25 = vpack.c.bf16 %v494_v24, %v494_v24  ;;  %v495_v26 = vadd.f32 %v494_v24, %v386_v18 }
 0x3a7   :  { %991 = vmatmul.mubr.msk.bf16.vlgmr.msra.gmra.mrb[20].mxu0 %vm156_vm3, %v496_v25  ;;  %v846_v60 = vmul.f32 0.25, %v495_v26  ;;  %v1059_v26 = vld [vmem:[%s1345_s5 + $0x30] sm:$0xff]  }
 0x3a8   :  { %1006 = vmatprep.mubr.msk.bf16.mxu0 %vm1108_vm0, %v1107_v1 }
 0x3a9   :  { %v847_v61 = vadd.f32 1e-10, %v846_v60 }
 0x3ab   :  { %1077 = vlog2.f32 %v847_v61 }
 0x3b5   :  { %v1078_v62 = vpop.eup %1077 }
 0x3b6   :  { %v849_v4 = vmul.f32 0.6931472, %v1078_v62 }
 0x3b8   :  { %v850_v7 = vmul.f32 %v849_v4, %v846_v60 }
 0x3ba   :  { %v851_v8 = vsel %vm156_vm3, %v850_v7, 0.0 }
 0x445   :  { %v210_v27 = vpop.f32.mrb[8].mxu0 }
 0x446   :  { %v956_v28 = vpop.f32.mrb[9].mxu0 }
 0x447   :  { %v213_v29 = vpop.f32.mrb[10].mxu0  ;;  %v889_v28 = vld [vmem:[%s1346_s6 + $0x4] ss:$0 sm:$0xff] }
 0x448   :  { %v957_v30 = vpop.f32.mrb[11].mxu0 }
 0x44d   :  { %v319_v31 = vpop.f32.mrb[12].mxu0 }
 0x44e   :  { %544 = vrot.lane.b32.xlu1 %v319_v31, %s1120_s19  ;;  %v968_v32 = vpop.f32.mrb[13].mxu0 }
 0x44f   :  { %v322_v33 = vpop.f32.mrb[14].mxu0 }
 0x450   :  { %v969_v34 = vpop.f32.mrb[15].mxu0 }
 0x472   :  { %v428_v37 = vpop.f32.mrb[16].mxu0 }
 0x473   :  { %548 = vrot.lane.b32.xlu0 %v428_v37, %s1121_s24  ;;  %v980_v38 = vpop.f32.mrb[17].mxu0 }
 0x474   :  { %v431_v39 = vpop.f32.mrb[18].mxu0 }
 0x475   :  { %v981_v40 = vpop.f32.mrb[19].mxu0 }
 0x47a   :  { %v537_v41 = vpop.f32.mrb[20].mxu0 }
 0x47b   :  { %552 = vrot.lane.b32.xlu1 %v537_v41, %s1122_s25  ;;  %v992_v42 = vpop.f32.mrb[21].mxu0 }
 0x47c   :  { %v540_v43 = vpop.f32.mrb[22].mxu0 }
 0x47d   :  { %v993_v44 = vpop.f32.mrb[23].mxu0 }
 0x4c0   :  { %v545_v45 = vpop.permute.xlu1 %544 }
 0x4c1   :  { %v555_v47 = vsel %vm109_vm2, %v210_v27, %v545_v45  ;;  %v1060_v27 = vld [vmem:[%s1345_s5 + $0x38] sm:$0xff]  }
 0x4e5   :  { %v549_v46 = vpop.permute.xlu0 %548 }
 0x4e6   :  { %v556_v48 = vsel %vm156_vm3, %v555_v47, %v549_v46 }
 0x4ed   :  { %v553_v49 = vpop.permute.xlu1 %552 }
 0x4ee   :  { %v558_v50 = vsel %vm557_vm4, %v556_v48, %v553_v49 }
 0x4ef   :  { %v559_v51 = vpack.c.bf16 %v558_v50, %v558_v50 }
 0x4f1   :  { %999 = vmatmul.mubr.msk.bf16.vlgmr.msra.gmra.mrb[12].mxu1 %vm59_vm1, %v559_v51 }
 0x4f2   :  { %1026 = vmatprep.mubr.msk.bf16.mxu1 %vm1108_vm0, %v1107_v1  ;;  %1011 = vmatpush3.bf16.msra.mxu1 %v1053_v10 }
 0x4f3   :  { %1012 = vmatprep.subr.bf16.mxu1 %v1107_v1 }
 0x4f6   :  { %1013 = vmatpush3.bf16.msra.mxu1 %v1054_v11 }
 0x4f7   :  { %1014 = vmatprep.subr.bf16.mxu1 %v1107_v1 }
 0x4fa   :  { %1015 = vmatpush3.bf16.msra.mxu1 %v1055_v12 }
 0x4fb   :  { %1016 = vmatprep.subr.bf16.mxu1 %v1107_v1 }
 0x4fe   :  { %1017 = vmatpush3.bf16.msra.mxu1 %v1056_v14 }
 0x4ff   :  { %1018 = vmatprep.subr.bf16.mxu1 %v1107_v1 }
 0x502   :  { %1019 = vmatpush3.bf16.msra.mxu1 %v1057_v15 }
 0x503   :  { %1020 = vmatprep.subr.bf16.mxu1 %v1107_v1 }
 0x506   :  { %1021 = vmatpush3.bf16.msra.mxu1 %v1058_v13 }
 0x507   :  { %1022 = vmatprep.subr.bf16.mxu1 %v1107_v1 }
 0x50a   :  { %1023 = vmatpush3.bf16.msra.mxu1 %v1059_v26 }
 0x50b   :  { %1024 = vmatprep.subr.bf16.mxu1 %v1107_v1 }
 0x50e   :  { %1025 = vmatpush3.bf16.msra.mxu1 %v1060_v27 }
 0x5c4   :  { %v617_v53 = vpop.f32.mrb[12].mxu1 }
 0x5c5   :  { %v618_v54 = vadd.f32 %v883_v52, %v617_v53  ;;  %v1000_v55 = vpop.f32.mrb[13].mxu1  ;;  %v902_v52 = vld [vmem:[%s1346_s6 + $0x6] ss:$0 sm:$0xff] }
 0x5c6   :  { %v620_v56 = vpop.f32.mrb[14].mxu1  ;;  %v903_v55 = vld [vmem:[%s1346_s6 + $0x7] ss:$0 sm:$0xff] }
 0x5c7   :  { %v1001_v57 = vpop.f32.mrb[15].mxu1  ;;  %v623_v58 = vadd.f32 %v618_v54, %v1177_v3  ;;  %v1051_v3 = vld [vmem:[%s1344_s4] sm:$0xff]  }
 0x5c8   :  { %1003 = vmatpush3.bf16.msra.mxu0 %v1051_v3 }
 0x5c9   :  { %v624_v59 = vsel %vm59_vm1, %v623_v58, 0.0  ;;  %1004 = vmatprep.subr.bf16.mxu0 %v1107_v1  ;;  %v893_v1 = vld [vmem:[%s1346_s6 + $0x5] ss:$0 sm:$0xff] }
 0x5ca   :  { %625 = vadd.xlane.f32.xlu0 %v624_v59 }
 0x5cc   :  { %1005 = vmatpush3.bf16.msra.mxu0 %v1052_v9 }
 0x657   :  { %v626_v63 = vpop.xlane.xlu0 %625 }
 0x658   :  { %v628_v0 = vmul.f32 0.03125, %v626_v63 }
 0x65a   :  { %v629_v2 = vsub.f32 %v623_v58, %v628_v0 }
 0x65c   :  { %v630_v5 = vmul.f32 %v629_v2, %v629_v2 }
 0x65e   :  { %v631_v6 = vsel %vm59_vm1, %v630_v5, 0.0 }
 0x65f   :  { %632 = vadd.xlane.f32.xlu1 %v631_v6 }
 0x663   :  { %852 = vadd.xlane.f32.xlu1 %v851_v8 }
 0x6ec   :  { %v633_v16 = vpop.xlane.xlu1 %632 }
 0x6ed   :  { %v634_v17 = vmul.f32 0.03125, %v633_v16 }
 0x6ef   :  { %v635_v18 = vadd.f32 1e-05, %v634_v17 }
 0x6f0   :  { %v853_v54 = vpop.xlane.xlu1 %852 }
 0x6f1   :  { %1079 = vrsqrt.f32 %v635_v18  ;;  %v854_v57 = vsub.f32 0.0, %v853_v54 }
 0x6fb   :  { %v1080_v19 = vpop.eup %1079 }
 0x6fc   :  { %v637_v21 = vmul.f32 %v1080_v19, %v629_v2 }
 0x6fe   :  { %v642_v23 = vmul.f32 %v887_v20, %v637_v21 }
 0x700   :  { %v647_v24 = vadd.f32 %v888_v22, %v642_v23 }
 0x702   :  { %v648_v25 = vpack.c.bf16 %v647_v24, %v647_v24 }
 0x704   :  { %1007 = vmatmul.mubr.msk.bf16.vlgmr.msra.gmra.mrb[24].mxu0 %vm59_vm1, %v648_v25 }
 0x7d7   :  { %v706_v29 = vpop.f32.mrb[24].mxu0 }
 0x7d8   :  { %v707_v30 = vadd.f32 %v889_v28, %v706_v29  ;;  %v1008_v31 = vpop.f32.mrb[25].mxu0 }
 0x7d9   :  { %v709_v32 = vpop.f32.mrb[26].mxu0 }
 0x7da   :  { %v712_v33 = vmax.f32 %v707_v30, 0.0  ;;  %v1009_v34 = vpop.f32.mrb[27].mxu0 }
 0x7dc   :  { %v713_v35 = vpack.c.bf16 %v712_v33, %v712_v33 }
 0x7de   :  { %1027 = vmatmul.mubr.bf16.vlgmr.msra.gmra.mrb[16].mxu1 %v713_v35 }
 0x8b1   :  { %v816_v36 = vpop.f32.mrb[16].mxu1 }
 0x8b2   :  { %v817_v37 = vadd.f32 %v893_v1, %v816_v36  ;;  %v1028_v38 = vpop.f32.mrb[17].mxu1 }
 0x8b3   :  { %v819_v39 = vpop.f32.mrb[18].mxu1 }
 0x8b4   :  { %v1029_v40 = vpop.f32.mrb[19].mxu1  ;;  %v822_v41 = vadd.f32 %v817_v37, %v647_v24 }
 0x8b6   :  { %v823_v42 = vsel %vm59_vm1, %v822_v41, 0.0 }
 0x8b7   :  { %824 = vadd.xlane.f32.xlu0 %v823_v42 }
 0x944   :  { %v825_v43 = vpop.xlane.xlu0 %824 }
 0x945   :  { %v826_v44 = vmul.f32 0.03125, %v825_v43 }
 0x947   :  { %v827_v45 = vsub.f32 %v822_v41, %v826_v44 }
 0x949   :  { %v828_v46 = vmul.f32 %v827_v45, %v827_v45 }
 0x94b   :  { %v829_v47 = vsel %vm59_vm1, %v828_v46, 0.0 }
 0x94c   :  { %830 = vadd.xlane.f32.xlu0 %v829_v47 }
 0x9d9   :  { %v831_v48 = vpop.xlane.xlu0 %830 }
 0x9da   :  { %v832_v49 = vmul.f32 0.03125, %v831_v48 }
 0x9dc   :  { %v833_v50 = vadd.f32 1e-05, %v832_v49 }
 0x9de   :  { %1081 = vrsqrt.f32 %v833_v50 }
 0x9e8   :  { %v1082_v51 = vpop.eup %1081 }
 0x9e9   :  { %v835_v53 = vmul.f32 %v1082_v51, %v827_v45 }
 0x9eb   :  { %v840_v56 = vmul.f32 %v902_v52, %v835_v53 }
 0x9ed   :  { %v845_v58 = vadd.f32 %v903_v55, %v840_v56 }
 0x9ef   :  { %v855_v59 = vsel %vm59_vm1, %v845_v58, %v854_v57 }
 0x9f0   :  { %856 = vst [vmem:[#allocation2] sm:$0xff] %v855_v59 }
 0x9f1   :  { %1094 = shalt.err (!%p1091_p4)
}
 0x9f2   :  { %s1095_s6 = scalar_lea.hbm %s1347_s7, 128 }
 0x9f3   :  { %p1096_p5 = scmp.ne.s32.totalorder %s1347_s7, %s1095_s6  ;;  %p1099_p6 = scmp.lt.u32.totalorder %s1095_s6, %s1347_s7 }
 0x9f5   :  { %p1101_p7 = pnand %p1099_p6, %p1096_p5 }
 0x9f7   :  { %1104 = shalt.err (!%p1101_p7)
}
 0x9f8   :  { %866 = dma.vmem_to_hbm [thread:$0]  %s864_s8, 128, %s1347_s7, [#allocation3]  }
 0x9f9   :  { %1105 = dma.done.wait [#allocation3], 128  }
 0x9fa   :  { %1106 = vsyncadd [#allocation3], 4294967168 }
 0x9fb   :  { %870 = vsyncpa [#allocation3], 1 }

</bundles_post_ra>
